<compile_context>
chip_gen: v6e
topology: v6e:2x2x1
jax: 0.10.0
libtpu: 0.0.40
codegen_flags: <defaults>
</compile_context>

<pallas_src>
import functools

import jax
import jax.numpy as jnp
from jax import lax
from jax.experimental import pallas as pl
from jax.experimental.pallas import tpu as pltpu


def _cotsr_kernel(xq_ref, xkv_ref, w_ref, b_ref, gamma_ref, o_ref,
                  *, n_batch, n_pos, cq):
    """One grid step == one attention stream (s=0 -> out1, s=1 -> out2).

      xq_ref    : (1, L, C)        f32   query + residual source
      xkv_ref   : (1, L, C)        f32   key / value source
      w_ref     : (1, 2C, 2cq+C)   bf16  fused block-diagonal [q|k|v] weights
      b_ref     : (1, 1, 2cq+C)    f32   fused biases
      gamma_ref : (1, 2)           f32   SMEM scalars (gamma1, gamma2)
      o_ref     : (1, C, L)        f32   lane-dense output slab
    with L = n_batch * n_pos.
    """
    s = pl.program_id(0)
    xq = xq_ref[0]                               # (L, C)  f32
    xkv = xkv_ref[0]                             # (L, C)  f32

    # ---- fused QKV projection: a single MXU push per grid step -------------
    x_cat = jnp.concatenate([xq, xkv], axis=-1).astype(jnp.bfloat16)   # (L, 2C)
    qkv = jnp.dot(x_cat, w_ref[0], preferred_element_type=jnp.float32)
    qkv = qkv + b_ref[0]                         # (L, 2cq + C)  f32
    qkv_bf = qkv.astype(jnp.bfloat16)

    q = qkv_bf[:, :cq]                           # (L, cq)  from xq
    k = qkv_bf[:, cq:2 * cq]                     # (L, cq)  from xkv
    v = qkv_bf[:, 2 * cq:]                       # (L, C)   from xkv

    # ---- per-batch attention (B is tiny & static -> unrolled) --------------
    # NOTE: for large N this (N, N) block must become a KV-tiled online
    # softmax (see header note).
    outs = []
    for b in range(n_batch):
        r0 = b * n_pos
        qb = q[r0:r0 + n_pos]                    # (N, cq)
        kb = k[r0:r0 + n_pos]                    # (N, cq)
        vb = v[r0:r0 + n_pos]                    # (N, C)
        # energy[i, j] = <q_i, k_j>: contract last dims, no explicit transpose.
        e = lax.dot_general(qb, kb, (((1,), (1,)), ((), ())),
                            preferred_element_type=jnp.float32)        # (N, N)
        e = e - jnp.max(e, axis=-1, keepdims=True)
        p = jnp.exp(e)                                                  # f32
        denom = jnp.sum(p, axis=-1, keepdims=True)                      # (N, 1)
        # Unnormalized P @ V, then scale by 1/denom on the EUP.
        ob = jnp.dot(p.astype(jnp.bfloat16), vb,
                     preferred_element_type=jnp.float32)                # (N, C)
        outs.append(ob * pl.reciprocal(denom, approx=True))
    out = jnp.concatenate(outs, axis=0)                                 # (L, C)

    g = gamma_ref[0, s]                          # SMEM scalar read
    # Residual + gamma; stored transposed so the slab is (C, L=128): the
    # last dim is a full 128 lanes -> unmasked vector stores.
    o_ref[0] = jnp.transpose(xq + g * out)


def cotsr_forward(x1, x2, params):
    """x1, x2: (B, C, H, W) float32 (NCHW, like the PyTorch module)."""
    B, C, H, W = x1.shape
    N = H * W
    L = B * N
    Cq = C // 8
    Ct = 2 * Cq + C

    def to_lc(x):                                # NCHW -> (B*N, C) rows
        return jnp.transpose(x.reshape(B, C, N), (0, 2, 1)).reshape(L, C)

    # Both temporal inputs stacked; stream s picks its query-source (index s)
    # and its key/value-source (index 1-s) via the BlockSpec index maps.
    xs = jnp.stack([to_lc(x1), to_lc(x2)])                   # (2, L, C) f32

    # Fused block-diagonal projection weights, one (2C, 2Cq+C) matrix per
    # stream.  Rows [0:C] see the query source, rows [C:2C] the kv source;
    # columns are [q | k | v].  Conv weights stored as (C_in, C_out).
    zq = jnp.zeros((C, Cq), jnp.float32)
    zv = jnp.zeros((C, C), jnp.float32)

    def block_w(wq_s, wk_o, wv_o):
        top = jnp.concatenate([wq_s, zq, zv], axis=1)        # query-source rows
        bot = jnp.concatenate([zq, wk_o, wv_o], axis=1)      # kv-source rows
        return jnp.concatenate([top, bot], axis=0)           # (2C, Ct)

    w_block = jnp.stack([
        block_w(params["wq1"], params["wk2"], params["wv2"]),   # stream 0: out1
        block_w(params["wq2"], params["wk1"], params["wv1"]),   # stream 1: out2
    ]).astype(jnp.bfloat16)                                   # (2, 2C, Ct) bf16

    b_block = jnp.stack([
        jnp.concatenate([params["bq1"], params["bk2"], params["bv2"]], axis=1),
        jnp.concatenate([params["bq2"], params["bk1"], params["bv1"]], axis=1),
    ])                                                        # (2, 1, Ct) f32

    out_t = pl.pallas_call(
        functools.partial(_cotsr_kernel, n_batch=B, n_pos=N, cq=Cq),
        grid=(2,),                                            # two streams
        in_specs=[
            pl.BlockSpec((1, L, C), lambda s: (s, 0, 0)),         # q/residual src
            pl.BlockSpec((1, L, C), lambda s: (1 - s, 0, 0)),     # k/v src
            pl.BlockSpec((1, 2 * C, Ct), lambda s: (s, 0, 0)),    # fused weights
            pl.BlockSpec((1, 1, Ct), lambda s: (s, 0, 0)),        # fused biases
            pl.BlockSpec(memory_space=pltpu.MemorySpace.SMEM),    # gammas
        ],
        out_specs=pl.BlockSpec((1, C, L), lambda s: (s, 0, 0)),
        out_shape=jax.ShapeDtypeStruct((2, C, L), jnp.float32),
        compiler_params=pltpu.CompilerParams(
            dimension_semantics=("parallel",)),
    )(xs, xs, w_block, b_block, params["gamma"])

    def from_cl(o):                              # (C, B*N) -> (B, C, H, W)
        return jnp.transpose(o.reshape(C, B, N), (1, 0, 2)).reshape(B, C, H, W)

    return from_cl(out_t[0]), from_cl(out_t[1])


def cotsr_reference(x1, x2, params):
    """Pure-JAX float32 reference replicating the PyTorch forward exactly."""
    B, C, H, W = x1.shape
    N = H * W

    x1_nc = jnp.transpose(x1.reshape(B, C, N), (0, 2, 1))
    x2_nc = jnp.transpose(x2.reshape(B, C, N), (0, 2, 1))

    def proj(x, w, b):                            # x: (B, N, C); w: (C, Cout)
        return jnp.einsum("bnc,co->bno", x, w) + b

    q1 = proj(x1_nc, params["wq1"], params["bq1"])
    k1 = proj(x1_nc, params["wk1"], params["bk1"])
    v1 = proj(x1_nc, params["wv1"], params["bv1"])
    q2 = proj(x2_nc, params["wq2"], params["bq2"])
    k2 = proj(x2_nc, params["wk2"], params["bk2"])
    v2 = proj(x2_nc, params["wv2"], params["bv2"])

    def attend(q, k, v):
        e = jnp.einsum("bnc,bmc->bnm", q, k)
        a = jax.nn.softmax(e, axis=-1)
        return jnp.einsum("bnm,bmc->bnc", a, v)

    g1 = params["gamma"][0, 0]
    g2 = params["gamma"][0, 1]
    o1 = x1_nc + g1 * attend(q1, k2, v2)
    o2 = x2_nc + g2 * attend(q2, k1, v1)
    to_nchw = lambda x: jnp.transpose(x, (0, 2, 1)).reshape(B, C, H, W)
    return to_nchw(o1), to_nchw(o2)


def init_params(key, C):
    """Deterministic synthetic params. Conv weights stored pre-transposed as
    (C_in, C_out); biases as (1, C_out).  PyTorch inits gamma to zero — here we
    use small nonzero gammas so the attention path actually affects the output."""
    Cq = C // 8
    ks = jax.random.split(key, 12)
    scale = 0.1

    def w(k, cin, cout):
        return scale * jax.random.normal(k, (cin, cout), dtype=jnp.float32)

    def b(k, cout):
        return scale * jax.random.normal(k, (1, cout), dtype=jnp.float32)

    return {
        "wq1": w(ks[0], C, Cq), "bq1": b(ks[1], Cq),
        "wk1": w(ks[2], C, Cq), "bk1": b(ks[3], Cq),
        "wv1": w(ks[4], C, C),  "bv1": b(ks[5], C),
        "wq2": w(ks[6], C, Cq), "bq2": b(ks[7], Cq),
        "wk2": w(ks[8], C, Cq), "bk2": b(ks[9], Cq),
        "wv2": w(ks[10], C, C), "bv2": b(ks[11], C),
        "gamma": jnp.array([[0.5, -0.25]], dtype=jnp.float32),
    }


if __name__ == "__main__":
    B, C, H, W = 2, 16, 8, 8                     # in_dim=16 so in_dim // 8 = 2
    key = jax.random.PRNGKey(0)
    kx1, kx2, kp = jax.random.split(key, 3)

    x1 = jax.random.normal(kx1, (B, C, H, W), dtype=jnp.float32)
    x2 = jax.random.normal(kx2, (B, C, H, W), dtype=jnp.float32)
    params = init_params(kp, C)

    out1, out2 = jax.jit(cotsr_forward)(x1, x2, params)
    jax.block_until_ready((out1, out2))

    ref1, ref2 = cotsr_reference(x1, x2, params)
    assert out1.shape == (B, C, H, W) and out2.shape == (B, C, H, W)
    # bf16 MXU operands inside the kernel -> slightly looser tolerance than f32.
    assert jnp.allclose(out1, ref1, atol=2e-2, rtol=2e-2), \
        float(jnp.max(jnp.abs(out1 - ref1)))
    assert jnp.allclose(out2, ref2, atol=2e-2, rtol=2e-2), \
        float(jnp.max(jnp.abs(out2 - ref2)))

    print("KERNEL_OK")
</pallas_src>

<mosaic_0001>
module attributes {stable_mosaic.version = 11 : i64} {
  func.func @_cotsr_kernel(%arg0: i32, %arg1: memref<1x128x16xf32, #tpu.memory_space<vmem>>, %arg2: memref<1x128x16xf32, #tpu.memory_space<vmem>>, %arg3: memref<1x32x20xbf16, #tpu.memory_space<vmem>>, %arg4: memref<1x1x20xf32, #tpu.memory_space<vmem>>, %arg5: memref<1x2xf32, #tpu.memory_space<smem>>, %arg6: memref<1x16x128xf32, #tpu.memory_space<vmem>>) attributes {dimension_semantics = [#tpu.dimension_semantics<parallel>], iteration_bounds = array<i64: 2>, scalar_prefetch = 0 : i64, scratch_operands = 0 : i64, tpu.core_type = #tpu.core_type<tc>, window_params = [{transform_indices = @transform_0, window_bounds = array<i64: 1, 128, 16>}, {transform_indices = @transform_1, window_bounds = array<i64: 1, 128, 16>}, {transform_indices = @transform_2, window_bounds = array<i64: 1, 32, 20>}, {transform_indices = @transform_3, window_bounds = array<i64: 1, 1, 20>}, {transform_indices = @transform_4, window_bounds = array<i64: 1, 2>}, {transform_indices = @transform_5, window_bounds = array<i64: 1, 16, 128>}]} {
    %c0 = arith.constant 0 : index
    %c0_0 = arith.constant 0 : index
    %c0_1 = arith.constant 0 : index
    %0 = vector.load %arg1[%c0, %c0_0, %c0_1] : memref<1x128x16xf32, #tpu.memory_space<vmem>>, vector<1x128x16xf32>
    %1 = vector.shape_cast %0 : vector<1x128x16xf32> to vector<128x16xf32>
    %c0_2 = arith.constant 0 : index
    %c0_3 = arith.constant 0 : index
    %c0_4 = arith.constant 0 : index
    %2 = vector.load %arg2[%c0_2, %c0_3, %c0_4] : memref<1x128x16xf32, #tpu.memory_space<vmem>>, vector<1x128x16xf32>
    %3 = vector.shape_cast %2 : vector<1x128x16xf32> to vector<128x16xf32>
    %4 = tpu.concatenate %1, %3 in 1 : vector<128x16xf32>, vector<128x16xf32> -> vector<128x32xf32>
    %5 = arith.truncf %4 : vector<128x32xf32> to vector<128x32xbf16>
    %c0_5 = arith.constant 0 : index
    %c0_6 = arith.constant 0 : index
    %c0_7 = arith.constant 0 : index
    %6 = vector.load %arg3[%c0_5, %c0_6, %c0_7] : memref<1x32x20xbf16, #tpu.memory_space<vmem>>, vector<1x32x20xbf16>
    %7 = vector.shape_cast %6 : vector<1x32x20xbf16> to vector<32x20xbf16>
    %cst = arith.constant dense<0.000000e+00> : vector<128x20xf32>
    %8 = tpu.matmul %5, %7, %cst {dimension_numbers = #tpu.dot_dimension_numbers<[1], [0], [0], [1], [0, 0, 1, 1], [], []>} : vector<128x32xbf16>, vector<32x20xbf16>, vector<128x20xf32> -> vector<128x20xf32>
    %c0_8 = arith.constant 0 : index
    %c0_9 = arith.constant 0 : index
    %c0_10 = arith.constant 0 : index
    %9 = vector.load %arg4[%c0_8, %c0_9, %c0_10] : memref<1x1x20xf32, #tpu.memory_space<vmem>>, vector<1x1x20xf32>
    %10 = vector.shape_cast %9 : vector<1x1x20xf32> to vector<1x20xf32>
    %11 = vector.broadcast %10 : vector<1x20xf32> to vector<128x20xf32>
    %12 = arith.addf %8, %11 : vector<128x20xf32>
    %13 = arith.truncf %12 : vector<128x20xf32> to vector<128x20xbf16>
    %14 = vector.extract_strided_slice %13 {offsets = [0, 0], sizes = [128, 2], strides = [1, 1]} : vector<128x20xbf16> to vector<128x2xbf16>
    %15 = vector.extract_strided_slice %13 {offsets = [0, 2], sizes = [128, 2], strides = [1, 1]} : vector<128x20xbf16> to vector<128x2xbf16>
    %16 = vector.extract_strided_slice %13 {offsets = [0, 4], sizes = [128, 16], strides = [1, 1]} : vector<128x20xbf16> to vector<128x16xbf16>
    %17 = vector.extract_strided_slice %14 {offsets = [0, 0], sizes = [64, 2], strides = [1, 1]} : vector<128x2xbf16> to vector<64x2xbf16>
    %18 = vector.extract_strided_slice %15 {offsets = [0, 0], sizes = [64, 2], strides = [1, 1]} : vector<128x2xbf16> to vector<64x2xbf16>
    %19 = vector.extract_strided_slice %16 {offsets = [0, 0], sizes = [64, 16], strides = [1, 1]} : vector<128x16xbf16> to vector<64x16xbf16>
    %cst_11 = arith.constant dense<0.000000e+00> : vector<64x64xf32>
    %20 = tpu.matmul %17, %18, %cst_11 {dimension_numbers = #tpu.dot_dimension_numbers<[1], [1], [0], [0], [0, 0, 1, 0], [], []>} : vector<64x2xbf16>, vector<64x2xbf16>, vector<64x64xf32> -> vector<64x64xf32>
    %cst_12 = arith.constant dense<0xFF800000> : vector<64xf32>
    %21 = vector.multi_reduction <maximumf>, %20, %cst_12 [1] : vector<64x64xf32> to vector<64xf32>
    %22 = vector.shape_cast %21 : vector<64xf32> to vector<64x1xf32>
    %23 = vector.broadcast %22 : vector<64x1xf32> to vector<64x64xf32>
    %24 = arith.subf %20, %23 : vector<64x64xf32>
    %25 = math.exp %24 : vector<64x64xf32>
    %cst_13 = arith.constant dense<0.000000e+00> : vector<64xf32>
    %26 = vector.multi_reduction <add>, %25, %cst_13 [1] : vector<64x64xf32> to vector<64xf32>
    %27 = vector.shape_cast %26 : vector<64xf32> to vector<64x1xf32>
    %28 = arith.truncf %25 : vector<64x64xf32> to vector<64x64xbf16>
    %cst_14 = arith.constant dense<0.000000e+00> : vector<64x16xf32>
    %29 = tpu.matmul %28, %19, %cst_14 {dimension_numbers = #tpu.dot_dimension_numbers<[1], [0], [0], [1], [0, 0, 1, 1], [], []>} : vector<64x64xbf16>, vector<64x16xbf16>, vector<64x16xf32> -> vector<64x16xf32>
    %30 = tpu.reciprocal %27 {approx = true} : vector<64x1xf32> -> vector<64x1xf32>
    %31 = vector.broadcast %30 : vector<64x1xf32> to vector<64x16xf32>
    %32 = arith.mulf %29, %31 : vector<64x16xf32>
    %33 = vector.extract_strided_slice %14 {offsets = [64, 0], sizes = [64, 2], strides = [1, 1]} : vector<128x2xbf16> to vector<64x2xbf16>
    %34 = vector.extract_strided_slice %15 {offsets = [64, 0], sizes = [64, 2], strides = [1, 1]} : vector<128x2xbf16> to vector<64x2xbf16>
    %35 = vector.extract_strided_slice %16 {offsets = [64, 0], sizes = [64, 16], strides = [1, 1]} : vector<128x16xbf16> to vector<64x16xbf16>
    %cst_15 = arith.constant dense<0.000000e+00> : vector<64x64xf32>
    %36 = tpu.matmul %33, %34, %cst_15 {dimension_numbers = #tpu.dot_dimension_numbers<[1], [1], [0], [0], [0, 0, 1, 0], [], []>} : vector<64x2xbf16>, vector<64x2xbf16>, vector<64x64xf32> -> vector<64x64xf32>
    %cst_16 = arith.constant dense<0xFF800000> : vector<64xf32>
    %37 = vector.multi_reduction <maximumf>, %36, %cst_16 [1] : vector<64x64xf32> to vector<64xf32>
    %38 = vector.shape_cast %37 : vector<64xf32> to vector<64x1xf32>
    %39 = vector.broadcast %38 : vector<64x1xf32> to vector<64x64xf32>
    %40 = arith.subf %36, %39 : vector<64x64xf32>
    %41 = math.exp %40 : vector<64x64xf32>
    %cst_17 = arith.constant dense<0.000000e+00> : vector<64xf32>
    %42 = vector.multi_reduction <add>, %41, %cst_17 [1] : vector<64x64xf32> to vector<64xf32>
    %43 = vector.shape_cast %42 : vector<64xf32> to vector<64x1xf32>
    %44 = arith.truncf %41 : vector<64x64xf32> to vector<64x64xbf16>
    %cst_18 = arith.constant dense<0.000000e+00> : vector<64x16xf32>
    %45 = tpu.matmul %44, %35, %cst_18 {dimension_numbers = #tpu.dot_dimension_numbers<[1], [0], [0], [1], [0, 0, 1, 1], [], []>} : vector<64x64xbf16>, vector<64x16xbf16>, vector<64x16xf32> -> vector<64x16xf32>
    %46 = tpu.reciprocal %43 {approx = true} : vector<64x1xf32> -> vector<64x1xf32>
    %47 = vector.broadcast %46 : vector<64x1xf32> to vector<64x16xf32>
    %48 = arith.mulf %45, %47 : vector<64x16xf32>
    %49 = tpu.concatenate %32, %48 in 0 : vector<64x16xf32>, vector<64x16xf32> -> vector<128x16xf32>
    %c0_19 = arith.constant 0 : index
    %50 = arith.index_cast %arg0 : i32 to index
    %51 = memref.load %arg5[%c0_19, %50] : memref<1x2xf32, #tpu.memory_space<smem>>
    %52 = vector.broadcast %51 : f32 to vector<128x16xf32>
    %53 = arith.mulf %52, %49 : vector<128x16xf32>
    %54 = arith.addf %1, %53 : vector<128x16xf32>
    %55 = tpu.transpose %54, [1, 0] : vector<128x16xf32> -> vector<16x128xf32>
    %c0_20 = arith.constant 0 : index
    %c0_21 = arith.constant 0 : index
    %c0_22 = arith.constant 0 : index
    %56 = vector.load %arg6[%c0_20, %c0_21, %c0_22] : memref<1x16x128xf32, #tpu.memory_space<vmem>>, vector<1x16x128xf32>
    %57 = vector.shape_cast %56 : vector<1x16x128xf32> to vector<16x128xf32>
    %58 = vector.shape_cast %55 : vector<16x128xf32> to vector<1x16x128xf32>
    tpu.vector_store %arg6[%c0_20, %c0_21, %c0_22], %58 {strides = array<i32>} : memref<1x16x128xf32, #tpu.memory_space<vmem>>, vector<1x16x128xf32>,
    return
  }
  func.func @transform_0(%arg0: i32) -> (i32, i32, i32) {
    %c0_i32 = arith.constant 0 : i32
    %c0_i32_0 = arith.constant 0 : i32
    %c0_i32_1 = arith.constant 0 : i32
    return %arg0, %c0_i32, %c0_i32_0 : i32, i32, i32
  }
  func.func @transform_1(%arg0: i32) -> (i32, i32, i32) {
    %c1_i32 = arith.constant 1 : i32
    %0 = arith.subi %c1_i32, %arg0 : i32
    %c0_i32 = arith.constant 0 : i32
    %c0_i32_0 = arith.constant 0 : i32
    %c0_i32_1 = arith.constant 0 : i32
    return %0, %c0_i32, %c0_i32_0 : i32, i32, i32
  }
  func.func @transform_2(%arg0: i32) -> (i32, i32, i32) {
    %c0_i32 = arith.constant 0 : i32
    %c0_i32_0 = arith.constant 0 : i32
    %c0_i32_1 = arith.constant 0 : i32
    return %arg0, %c0_i32, %c0_i32_0 : i32, i32, i32
  }
  func.func @transform_3(%arg0: i32) -> (i32, i32, i32) {
    %c0_i32 = arith.constant 0 : i32
    %c0_i32_0 = arith.constant 0 : i32
    %c0_i32_1 = arith.constant 0 : i32
    return %arg0, %c0_i32, %c0_i32_0 : i32, i32, i32
  }
  func.func @transform_4(%arg0: i32) -> (i32, i32) {
    %c0_i32 = arith.constant 0 : i32
    %c0_i32_0 = arith.constant 0 : i32
    %c0_i32_1 = arith.constant 0 : i32
    return %c0_i32, %c0_i32_0 : i32, i32
  }
  func.func @transform_5(%arg0: i32) -> (i32, i32, i32) {
    %c0_i32 = arith.constant 0 : i32
    %c0_i32_0 = arith.constant 0 : i32
    %c0_i32_1 = arith.constant 0 : i32
    return %arg0, %c0_i32, %c0_i32_0 : i32, i32, i32
  }
}

</mosaic_0001>

<bundles_post_ra>
// kernel: squeeze.3
= control target key start
LH: loop header
LB: loop body
LE: loop exit
PB: predicated region body
PF: predicated region fallthrough
CT: control target
= control target key end

     0   :  { %vm3_vm0 = vcmask 523264   ;;  %s239_s0 = inlined_call_operand.vmem [shape: f32[1,16,128], index: 0, kind: input, shape index: {}]   ;;  %s240_s1 = inlined_call_operand.vmem [shape: f32[16,2,64], index: 1, kind: output, shape index: {}]  }
   0x1   :  { %v13_v0 = vld [vmem:[%s239_s0] sm:$0xff]   ;;  %v157_v1 = vld [vmem:[%s239_s0 + $0x8] sm:$0xff]   ;;  %s174_s0 = smov 64  }
   0x2   :  { %14 = vrot.lane.b32.xlu0 %v13_v0, %s174_s0  ;;  %4 = vst.msk [vmem:[#allocation0] ss:$8 sm:$0xf] %vm3_vm0, %v13_v0   ;;  %5 = vst.msk [vmem:[#allocation0] ss:$8 sm:$0xf0] %vm3_vm0, %v13_v0  }
   0x3   :  { %10 = vst.msk [vmem:[#allocation0 + $0x40] ss:$8 sm:$0xf] %vm3_vm0, %v157_v1   ;;  %12 = vst.msk [vmem:[#allocation0 + $0x40] ss:$8 sm:$0xf0] %vm3_vm0, %v157_v1  }
   0x6   :  { %23 = vrot.lane.b32.xlu0 %v157_v1, %s174_s0 }
  0x74   :  { %v15_v2 = vpop.permute.xlu0 %14  }
  0x75   :  { %18 = vst.msk [vmem:[#allocation0 + $0x1] ss:$8 sm:$0xf] %vm3_vm0, %v15_v2   ;;  %20 = vst.msk [vmem:[#allocation0 + $0x1] ss:$8 sm:$0xf0] %vm3_vm0, %v15_v2  }
  0x78   :  { %v24_v3 = vpop.permute.xlu0 %23  }
  0x79   :  { %27 = vst.msk [vmem:[#allocation0 + $0x41] ss:$8 sm:$0xf] %vm3_vm0, %v24_v3   ;;  %29 = vst.msk [vmem:[#allocation0 + $0x41] ss:$8 sm:$0xf0] %vm3_vm0, %v24_v3  }
  0x7c   :  { %v34_v4 = vld [vmem:[#allocation0] sm:$0x3]  ;;  %v39_v5 = vld [vmem:[#allocation0 + $0x8] sm:$0x3]  ;;  %v45_v6 = vld [vmem:[#allocation0 + $0x10] sm:$0x3] }
  0x7d   :  { %37 = vst [vmem:[%s240_s1] sm:$0x3] %v34_v4  ;;  %158 = vst [vmem:[%s240_s1 + $0x2] sm:$0x3] %v39_v5  ;;  %v52_v7 = vld [vmem:[#allocation0 + $0x18] sm:$0x3] }
  0x7e   :  { %159 = vst [vmem:[%s240_s1 + $0x4] sm:$0x3] %v45_v6  ;;  %v59_v8 = vld [vmem:[#allocation0 + $0x20] sm:$0x3]  ;;  %v66_v9 = vld [vmem:[#allocation0 + $0x28] sm:$0x3] }
  0x7f   :  { %160 = vst [vmem:[%s240_s1 + $0x6] sm:$0x3] %v52_v7  ;;  %161 = vst [vmem:[%s240_s1 + $0x8] sm:$0x3] %v59_v8  ;;  %v73_v10 = vld [vmem:[#allocation0 + $0x30] sm:$0x3] }
  0x80   :  { %162 = vst [vmem:[%s240_s1 + $0xa] sm:$0x3] %v66_v9  ;;  %v80_v11 = vld [vmem:[#allocation0 + $0x38] sm:$0x3]  ;;  %163 = vst [vmem:[%s240_s1 + $0xc] sm:$0x3] %v73_v10 }
  0x81   :  { %164 = vst [vmem:[%s240_s1 + $0xe] sm:$0x3] %v80_v11  ;;  %v87_v12 = vld [vmem:[#allocation0 + $0x40] sm:$0x3]  ;;  %v94_v13 = vld [vmem:[#allocation0 + $0x48] sm:$0x3] }
  0x82   :  { %v101_v14 = vld [vmem:[#allocation0 + $0x50] sm:$0x3]  ;;  %165 = vst [vmem:[%s240_s1 + $0x10] sm:$0x3] %v87_v12  ;;  %166 = vst [vmem:[%s240_s1 + $0x12] sm:$0x3] %v94_v13 }
  0x83   :  { %167 = vst [vmem:[%s240_s1 + $0x14] sm:$0x3] %v101_v14  ;;  %v108_v15 = vld [vmem:[#allocation0 + $0x58] sm:$0x3]  ;;  %v115_v16 = vld [vmem:[#allocation0 + $0x60] sm:$0x3] }
  0x84   :  { %v122_v17 = vld [vmem:[#allocation0 + $0x68] sm:$0x3]  ;;  %168 = vst [vmem:[%s240_s1 + $0x16] sm:$0x3] %v108_v15  ;;  %169 = vst [vmem:[%s240_s1 + $0x18] sm:$0x3] %v115_v16 }
  0x85   :  { %170 = vst [vmem:[%s240_s1 + $0x1a] sm:$0x3] %v122_v17  ;;  %v129_v18 = vld [vmem:[#allocation0 + $0x70] sm:$0x3]  ;;  %v136_v19 = vld [vmem:[#allocation0 + $0x78] sm:$0x3] }
  0x86   :  { %171 = vst [vmem:[%s240_s1 + $0x1c] sm:$0x3] %v129_v18  ;;  %172 = vst [vmem:[%s240_s1 + $0x1e] sm:$0x3] %v136_v19 }

// kernel: cotsr_forward.1
= control target key start
LH: loop header
LB: loop body
LE: loop exit
PB: predicated region body
PF: predicated region fallthrough
CT: control target
= control target key end

     0   :  { %10 = vsyncpa [#allocation3], 0  ;;  %s1680_s18 = smov 0   ;;  %s2027_s0 = inlined_call_operand.vmem [shape: f32[2,128,16], index: 0, kind: input, shape index: {}, may-alias: {0,1}]   ;;  %s2028_s1 = inlined_call_operand.vmem [shape: f32[2,128,16], index: 1, kind: input, shape index: {}, may-alias: {0,1}]   ;;  %s2029_s2 = inlined_call_operand.vmem [shape: bf16[2,32,20], index: 2, kind: input, shape index: {}]   ;;  %s2030_s3 = inlined_call_operand.vmem [shape: f32[2,1,20], index: 3, kind: input, shape index: {}]   ;;  %s2031_s4 = inlined_call_operand.vmem [shape: f32[1,2], index: 4, kind: input, shape index: {}]   ;;  %s2032_s5 = inlined_call_operand.vmem [shape: f32[2,16,128], index: 5, kind: output, shape index: {}]  }
   0x1 LB: > { %s1686_s19 = sadd.s32 4294967295, %s1644_s18   ;;  %p1311_p0 = scmp.ge.s32.totalorder %s1644_s18, 1  ;;  %s1644_s18 = sphi %s1680_s18, %s16_s18  }
   0x2   : > { %p174_p1 = scmp.lt.s32.totalorder %s1644_s18, 3  ;;  %s187_s22 = sshll.u32 %s2031_s4, 4  ;;  %s188_s22 = int_to_ptr.vmem [resolvable:$true] %s187_s22 }
   0x3   : > { %p1499_p3 = scmp.eq.s32.totalorder %s1686_s19, 0  ;;  %s1619_s24 = scalar_lea.vmem %s188_s22, 16 }
   0x4   : > { %p1693_p2 = pnand %p1311_p0, %p174_p1  ;;  %p1620_p6 = scmp.ne.s32.totalorder %s188_s22, %s1619_s24 }
   0x5   : > { %p1627_p10 = scmp.lt.s32.totalorder %s188_s22, %s188_s22  ;;  %p1628_p11 = scmp.lt.s32.totalorder %s1619_s24, %s1619_s24 }
   0x6   : > { %p1495_p4 = pneg %p1693_p2 }
   0x7   : > { %p1629_p12 = por %p1628_p11, %p1627_p10 }
   0x8   : > { %p1496_p5 = pnand %p1499_p3, %p1495_p4 }
   0xa   : > { %p1621_p7 = pneg %p1496_p5 }
   0xc   : > { %p1622_p8 = pnand %p1621_p7, %p1620_p6 }
   0xe   : > { %p1623_p9 = pneg %p1622_p8 }
  0x10   : > { %p1630_p13 = pnand %p1629_p12, %p1623_p9 }
  0x12   : > { %1633 = shalt.err (!%p1630_p13)
}
  0x13   : > { %s1646_s25 = smov [#allocation2]   ;;  %232 = sbr.rel (%p1693_p2) target bundleno = 1219 (0x4c3), region = 40 }
  0x14   : > { %1498 = dma.vmem_to_smem (!%p1496_p5), %s188_s22, 16, %s1646_s25, [#allocation3]  }
  0x18   : > { %1639 = dma.done.wait (%p1499_p3), [#allocation3], 16  }
  0x19   : > { %1641 = vsyncadd (%p1499_p3), [#allocation3], 4294967280 }
  0x1a   : > { %238 = sfence }
  0x1b   : > { %s280_s26 = ssub.s32 1, %s1686_s19  ;;  %p275_p1 = scmp.lt.s32.totalorder %s1686_s19, 1  ;;  %vm397_vm0 = vcmask 130048   ;;  %vm445_vm1 = vcmask 261120   ;;  %vm587_vm2 = vcmask 15360   ;;  %vm677_vm3 = vcmask 523264  }
  0x1c   : > { %p281_p0 = scmp.lt.s32.totalorder %s280_s26, 1  ;;  %s1647_s8 = smov 16  }
  0x1d   : > { %s1711_s27 = scalar_select %p275_p1, %s1686_s19, 1 }
  0x1e   : > { %s2035_s26 = smov (!%p281_p0, %s280_s26), 1  ;;  %s1648_s21 = smov 126  }
  0x1f   : > { %s1354_s28 = sshll.u32 %s2035_s26, 7  ;;  %s1355_s7 = sshll.u32 %s1711_s27, 4 }
  0x20   : > { %s1716_s6 = scalar_lea.vmem %s2028_s1, %s1354_s28  ;;  %s291_s11 = scalar_lea.vmem %s2029_s2, %s1355_s7 }
  0x21   : > { %v317_v0 = vld [vmem:[%s1716_s6] sm:$0xff]  ;;  %v318_v1 = vld [vmem:[%s1716_s6 + $0x8] sm:$0xff]  ;;  %v319_v2 = vld [vmem:[%s1716_s6 + $0x10] sm:$0xff]  ;;  %s1353_s12 = sshll.u32 %s1711_s27, 7  ;;  %s294_s20 = scalar_lea.vmem %s2030_s3, %s1711_s27 }
  0x22   : > { %v1513_v3 = vpack.i.bf16 %v318_v1, %v317_v0  ;;  %v320_v4 = vld [vmem:[%s1716_s6 + $0x18] sm:$0xff]  ;;  %v321_v5 = vld [vmem:[%s1716_s6 + $0x20] sm:$0xff]  ;;  %v322_v6 = vld [vmem:[%s1716_s6 + $0x28] sm:$0xff]  ;;  %s1744_s15 = scalar_lea.vmem %s2027_s0, %s1353_s12  ;;  %s1649_s22 = smov 124  }
  0x23   : > { %v1523_v7 = vpack.i.bf16 %v322_v6, %v321_v5  ;;  %v323_v8 = vld [vmem:[%s1716_s6 + $0x30] sm:$0xff]  ;;  %v324_v9 = vld [vmem:[%s1716_s6 + $0x38] sm:$0xff]  ;;  %v1518_v10 = vpack.i.bf16 %v320_v4, %v319_v2  ;;  %v325_v12 = vld [vmem:[%s1716_s6 + $0x40] sm:$0xff]  ;;  %s1141_s23 = sld [smem:[#allocation2 + %s1686_s19]]  ;;  %s299_s25 = scalar_lea.vmem %s2032_s5, %s1355_s7 }
  0x24   : > { %1514 = vrot.lane.b32.xlu0 %v1513_v3, %s1647_s8  ;;  %v1528_v11 = vpack.i.bf16 %v324_v9, %v323_v8  ;;  %v326_v13 = vld [vmem:[%s1716_s6 + $0x48] sm:$0xff]  ;;  %v327_v14 = vld [vmem:[%s1716_s6 + $0x50] sm:$0xff]  ;;  %v328_v15 = vld [vmem:[%s1716_s6 + $0x58] sm:$0xff] }
  0x25   : > { %1524 = vrot.lane.b32.xlu1 %v1523_v7, %s1647_s8  ;;  %v1553_v16 = vld [vmem:[%s291_s11 + $0x8] sm:$0xff]   ;;  %v1533_v17 = vpack.i.bf16 %v326_v13, %v325_v12  ;;  %v1538_v18 = vpack.i.bf16 %v328_v15, %v327_v14  ;;  %v329_v19 = vld [vmem:[%s1716_s6 + $0x60] sm:$0xff]  ;;  %v331_v22 = vld [vmem:[%s1716_s6 + $0x70] sm:$0xff] }
  0x26   : > { %v330_v20 = vld [vmem:[%s1716_s6 + $0x68] sm:$0xff]  ;;  %1399 = vmatprep.subr.bf16.mxu0 %v1553_v16  ;;  %v1554_v21 = vld [vmem:[%s291_s11] sm:$0xff]   ;;  %v332_v23 = vld [vmem:[%s1716_s6 + $0x78] sm:$0xff] }
  0x27   : > { %1400 = vmatpush3.bf16.msra.mxu0 %v1553_v16  ;;  %v1543_v24 = vpack.i.bf16 %v330_v20, %v329_v19  ;;  %v1548_v25 = vpack.i.bf16 %v332_v23, %v331_v22  ;;  %v1747_v27 = vld [vmem:[%s1744_s15] sm:$0xff]  ;;  %v1750_v28 = vld [vmem:[%s1744_s15 + $0x8] sm:$0xff]  ;;  %v1763_v39 = vld [vmem:[%s1744_s15 + $0x10] sm:$0xff] }
  0x28   : > { %1519 = vrot.lane.b32.xlu0 %v1518_v10, %s1647_s8  ;;  %1401 = vmatprep.subr.bf16.mxu0 %v1554_v21  ;;  %v1753_v32 = vld [vmem:[%s1744_s15 + $0x20] sm:$0xff]  ;;  %v1756_v33 = vld [vmem:[%s1744_s15 + $0x28] sm:$0xff]  ;;  %v1766_v40 = vld [vmem:[%s1744_s15 + $0x18] sm:$0xff] }
  0x29   : > { %1529 = vrot.lane.b32.xlu1 %v1528_v11, %s1647_s8  ;;  %v1778_v53 = vld [vmem:[%s1744_s15 + $0x30] sm:$0xff]  ;;  %v1781_v54 = vld [vmem:[%s1744_s15 + $0x38] sm:$0xff]  ;;  %v1784_v58 = vld [vmem:[%s1744_s15 + $0x40] sm:$0xff] }
  0x2a   : > { %v1787_v59 = vld [vmem:[%s1744_s15 + $0x48] sm:$0xff]  ;;  %v1800_v6 = vld [vmem:[%s1744_s15 + $0x50] sm:$0xff]  ;;  %v1803_v7 = vld [vmem:[%s1744_s15 + $0x58] sm:$0xff] }
  0x2b   : > { %1402 = vmatpush3.bf16.msra.mxu0 %v1554_v21  ;;  %v1806_v10 = vld [vmem:[%s1744_s15 + $0x60] sm:$0xff]  ;;  %v1809_v11 = vld [vmem:[%s1744_s15 + $0x68] sm:$0xff]  ;;  %v1822_v21 = vld [vmem:[%s1744_s15 + $0x70] sm:$0xff] }
  0x2c   : > { %1534 = vrot.lane.b32.xlu0 %v1533_v17, %s1647_s8  ;;  %v1825_v22 = vld [vmem:[%s1744_s15 + $0x78] sm:$0xff] }
  0x2d   : > { %1539 = vrot.lane.b32.xlu1 %v1538_v18, %s1647_s8 }
  0x30   : > { %1544 = vrot.lane.b32.xlu0 %v1543_v24, %s1647_s8 }
  0x31   : > { %1549 = vrot.lane.b32.xlu1 %v1548_v25, %s1647_s8 }
  0x96   : > { %v1515_v26 = vpop.permute.xlu0 %1514 }
  0x97   : > { %v1517_v29 = vunpack.i.h.bf16 %v1515_v26  ;;  %v1516_v30 = vunpack.i.l.bf16 %v1515_v26  ;;  %v1525_v31 = vpop.permute.xlu1 %1524 }
  0x98   : > { %v1527_v34 = vunpack.i.h.bf16 %v1525_v31  ;;  %v1526_v35 = vunpack.i.l.bf16 %v1525_v31  ;;  %v1324_v31 = vld [vmem:[%s294_s20] ss:$0 sm:$0xff] }
  0x99   : > { %v398_v36 = vsel %vm397_vm0, %v1747_v27, %v1516_v30  ;;  %v399_v37 = vsel %vm397_vm0, %v1750_v28, %v1517_v29 }
  0x9a   : > { %v1520_v38 = vpop.permute.xlu0 %1519  ;;  %v414_v41 = vpack.c.bf16 %v399_v37, %v398_v36  ;;  %v402_v42 = vsel %vm397_vm0, %v1753_v32, %v1526_v35  ;;  %v403_v43 = vsel %vm397_vm0, %v1756_v33, %v1527_v34 }
  0x9b   : > { %v1522_v44 = vunpack.i.h.bf16 %v1520_v38  ;;  %v1521_v45 = vunpack.i.l.bf16 %v1520_v38  ;;  %v1530_v46 = vpop.permute.xlu1 %1529  ;;  %v416_v47 = vpack.c.bf16 %v403_v43, %v402_v42 }
  0x9c   : > { %1403 = vmatprep.mubr.msk.bf16.mxu0 %vm445_vm1, %v414_v41  ;;  %v1532_v50 = vunpack.i.h.bf16 %v1530_v46  ;;  %v1531_v51 = vunpack.i.l.bf16 %v1530_v46 }
  0x9d   : > { %v400_v48 = vsel %vm397_vm0, %v1763_v39, %v1521_v45  ;;  %v401_v49 = vsel %vm397_vm0, %v1766_v40, %v1522_v44 }
  0x9e   : > { %v415_v52 = vpack.c.bf16 %v401_v49, %v400_v48  ;;  %v1535_v55 = vpop.permute.xlu0 %1534  ;;  %v404_v60 = vsel %vm397_vm0, %v1778_v53, %v1531_v51  ;;  %v405_v61 = vsel %vm397_vm0, %v1781_v54, %v1532_v50 }
  0x9f   : > { %v1537_v56 = vunpack.i.h.bf16 %v1535_v55  ;;  %v1536_v57 = vunpack.i.l.bf16 %v1535_v55  ;;  %v1540_v0 = vpop.permute.xlu1 %1539  ;;  %v417_v2 = vpack.c.bf16 %v405_v61, %v404_v60 }
  0xa0   : > { %1404 = vmatmul.mubr.msk.bf16.vlgmr.msra.gmra.mxu0 %vm445_vm1, %v415_v52  ;;  %v1542_v4 = vunpack.i.h.bf16 %v1540_v0  ;;  %v1541_v5 = vunpack.i.l.bf16 %v1540_v0 }
  0xa1   : > { %1407 = vmatprep.mubr.msk.bf16.mxu0 %vm445_vm1, %v416_v47  ;;  %v406_v62 = vsel %vm397_vm0, %v1784_v58, %v1536_v57  ;;  %v407_v63 = vsel %vm397_vm0, %v1787_v59, %v1537_v56 }
  0xa2   : > { %v1545_v1 = vpop.permute.xlu0 %1544  ;;  %v418_v3 = vpack.c.bf16 %v407_v63, %v406_v62  ;;  %v408_v12 = vsel %vm397_vm0, %v1800_v6, %v1541_v5  ;;  %v409_v13 = vsel %vm397_vm0, %v1803_v7, %v1542_v4 }
  0xa3   : > { %v1547_v8 = vunpack.i.h.bf16 %v1545_v1  ;;  %v1546_v9 = vunpack.i.l.bf16 %v1545_v1  ;;  %v1550_v16 = vpop.permute.xlu1 %1549  ;;  %v419_v17 = vpack.c.bf16 %v409_v13, %v408_v12 }
  0xa4   : > { %v1552_v19 = vunpack.i.h.bf16 %v1550_v16  ;;  %v1551_v20 = vunpack.i.l.bf16 %v1550_v16 }
  0xa5   : > { %v410_v14 = vsel %vm397_vm0, %v1806_v10, %v1546_v9  ;;  %v411_v15 = vsel %vm397_vm0, %v1809_v11, %v1547_v8 }
  0xa6   : > { %v420_v18 = vpack.c.bf16 %v411_v15, %v410_v14  ;;  %v412_v23 = vsel %vm397_vm0, %v1822_v21, %v1551_v20  ;;  %v413_v24 = vsel %vm397_vm0, %v1825_v22, %v1552_v19 }
  0xa7   : > { %v421_v25 = vpack.c.bf16 %v413_v24, %v412_v23 }
  0xa8   : > { %1408 = vmatmul.mubr.msk.bf16.gmra.mxu0 %vm445_vm1, %v417_v2 }
  0xa9   : > { %1411 = vmatprep.mubr.msk.bf16.mxu0 %vm445_vm1, %v418_v3 }
  0xb0   : > { %1412 = vmatmul.mubr.msk.bf16.gmra.mxu0 %vm445_vm1, %v419_v17 }
  0xb1   : > { %1415 = vmatprep.mubr.msk.bf16.mxu0 %vm445_vm1, %v420_v18 }
  0xb8   : > { %1416 = vmatmul.mubr.msk.bf16.gmra.mxu0 %vm445_vm1, %v421_v25 }
 0x160   : > { %v1405_v26 = vpop.f32.mrf.mxu0 }
 0x161   : > { %v513_v51 = vadd.f32 %v1405_v26, %v1324_v31 }
 0x162   : > { %v504_v29 = vpop.f32.mrf.mxu0 }
 0x163   : > { %v505_v35 = vadd.f32 %v1324_v31, %v504_v29 }
 0x164   : > { %v1406_v30 = vpop.f32.mrf.mxu0 }
 0x165   : > { %v516_v46 = vadd.f32 %v1406_v30, %v1324_v31 }
 0x166   : > { %v507_v34 = vpop.f32.mrf.mxu0 }
 0x167   : > { %v508_v36 = vadd.f32 %v1324_v31, %v507_v34  ;;  %v568_v56 = vpack.c.bf16 %v516_v46, %v513_v51 }
 0x168   : > { %v1409_v37 = vpop.f32.mrf.mxu0 }
 0x169   : > { %v567_v38 = vpack.c.bf16 %v508_v36, %v505_v35  ;;  %v529_v43 = vadd.f32 %v1409_v37, %v1324_v31 }
 0x16a   : > { %v520_v41 = vpop.f32.mrf.mxu0 }
 0x16b   : > { %1427 = vmatprep.mubr.msk.bf16.mxu1 %vm587_vm2, %v567_v38  ;;  %v521_v47 = vadd.f32 %v1324_v31, %v520_v41 }
 0x16c   : > { %v1410_v42 = vpop.f32.mrf.mxu0 }
 0x16d   : > { %v532_v44 = vadd.f32 %v1410_v42, %v1324_v31 }
 0x16e   : > { %v523_v45 = vpop.f32.mrf.mxu0 }
 0x16f   : > { %v1839_v48 = vpack.c.bf16 %v532_v44, %v529_v43  ;;  %v524_v49 = vadd.f32 %v1324_v31, %v523_v45 }
 0x170   : > { %v1413_v50 = vpop.f32.mrf.mxu0 }
 0x171   : > { %v1841_v52 = vpack.c.bf16 %v524_v49, %v521_v47  ;;  %585 = vrot.lane.b32.xlu0 %v1839_v48, %s1648_s21  ;;  %v545_v1 = vadd.f32 %v1413_v50, %v1324_v31 }
 0x172   : > { %v536_v55 = vpop.f32.mrf.mxu0 }
 0x173   : > { %583 = vrot.lane.b32.xlu1 %v1841_v52, %s1648_s21  ;;  %v537_v12 = vadd.f32 %v1324_v31, %v536_v55 }
 0x174   : > { %v1414_v57 = vpop.f32.mrf.mxu0 }
 0x175   : > { %581 = vrot.lane.b32.xlu0 %v568_v56, %s1648_s21  ;;  %v548_v2 = vadd.f32 %v1414_v57, %v1324_v31 }
 0x176   : > { %v539_v60 = vpop.f32.mrf.mxu0 }
 0x177   : > { %579 = vrot.lane.b32.xlu1 %v567_v38, %s1648_s21  ;;  %v1847_v13 = vpack.c.bf16 %v548_v2, %v545_v1  ;;  %v540_v14 = vadd.f32 %v1324_v31, %v539_v60 }
 0x178   : > { %v1417_v61 = vpop.f32.mrf.mxu0 }
 0x179   : > { %v561_v63 = vadd.f32 %v1417_v61, %v1324_v31  ;;  %v1853_v16 = vpack.c.bf16 %v540_v14, %v537_v12 }
 0x17a   : > { %v552_v62 = vpop.f32.mrf.mxu0 }
 0x17b   : > { %v553_v3 = vadd.f32 %v1324_v31, %v552_v62 }
 0x17c   : > { %v1418_v0 = vpop.f32.mrf.mxu0 }
 0x17d   : > { %v564_v4 = vadd.f32 %v1418_v0, %v1324_v31 }
 0x17e   : > { %v555_v5 = vpop.f32.mrf.mxu0 }
 0x17f   : > { %v1845_v8 = vpack.c.bf16 %v564_v4, %v561_v63  ;;  %v556_v9 = vadd.f32 %v1324_v31, %v555_v5 }
 0x181   : > { %v1849_v15 = vpack.c.bf16 %v556_v9, %v553_v3  ;;  %869 = vrot.lane.b32.xlu0 %v1845_v8, %s1648_s21 }
 0x183   : > { %867 = vrot.lane.b32.xlu1 %v1849_v15, %s1648_s21 }
 0x185   : > { %865 = vrot.lane.b32.xlu0 %v1847_v13, %s1648_s21 }
 0x187   : > { %863 = vrot.lane.b32.xlu1 %v1853_v16, %s1648_s21 }
 0x189   : > { %758 = vrot.lane.b32.xlu0 %v1841_v52, %s1649_s22 }
 0x18b   : > { %760 = vrot.lane.b32.xlu1 %v1839_v48, %s1649_s22 }
 0x18f   : > { %756 = vrot.lane.b32.xlu1 %v568_v56, %s1649_s22 }
 0x193   : > { %754 = vrot.lane.b32.xlu1 %v567_v38, %s1649_s22 }
 0x1e3   : > { %v586_v17 = vpop.permute.xlu0 %585 }
 0x1e4   : > { %1483 = vmatprep.subr.msk.bf16.mxu1 %vm587_vm2, %v586_v17  ;;  %v610_v18 = vsel %vm587_vm2, %v586_v17, 0 }
 0x1e5   : > { %1420 = vmatpush3.bf16.xpose.msra.mxu1 %v610_v18  ;;  %v584_v19 = vpop.permute.xlu1 %583 }
 0x1e6   : > { %1484 = vmatprep.subr.msk.bf16.mxu1 %vm587_vm2, %v584_v19  ;;  %v607_v20 = vsel %vm587_vm2, %v584_v19, 0 }
 0x1e7   : > { %v582_v23 = vpop.permute.xlu0 %581 }
 0x1e8   : > { %v604_v26 = vsel %vm587_vm2, %v582_v23, 0 }
 0x1e9   : > { %v580_v24 = vpop.permute.xlu1 %579 }
 0x1ea   : > { %v601_v34 = vsel %vm587_vm2, %v580_v24, 0 }
 0x1ed   : > { %1422 = vmatpush3.bf16.xpose.msra.mxu1 %v607_v20 }
 0x1ee   : > { %1485 = vmatprep.subr.msk.bf16.mxu1 %vm587_vm2, %v582_v23 }
 0x1f3   : > { %v870_v25 = vpop.permute.xlu0 %869 }
 0x1f4   : > { %v893_v38 = vsel %vm587_vm2, %v870_v25, 0 }
 0x1f5   : > { %1424 = vmatpush3.bf16.xpose.msra.mxu1 %v604_v26  ;;  %v868_v29 = vpop.permute.xlu1 %867 }
 0x1f6   : > { %1486 = vmatprep.subr.msk.bf16.mxu1 %vm587_vm2, %v580_v24  ;;  %v890_v42 = vsel %vm587_vm2, %v868_v29, 0 }
 0x1f7   : > { %v866_v30 = vpop.permute.xlu0 %865 }
 0x1f8   : > { %v887_v43 = vsel %vm587_vm2, %v866_v30, 0 }
 0x1f9   : > { %v864_v31 = vpop.permute.xlu1 %863 }
 0x1fa   : > { %v884_v44 = vsel %vm587_vm2, %v864_v31, 0 }
 0x1fb   : > { %v759_v36 = vpop.permute.xlu0 %758 }
 0x1fd   : > { %1426 = vmatpush3.bf16.xpose.msra.mxu1 %v601_v34  ;;  %v761_v35 = vpop.permute.xlu1 %760 }
 0x1fe   : > { %1435 = vmatprep.subr.bf16.mxu0 %v761_v35  ;;  %1487 = vmatprep.subr.msk.bf16.mxu1 %vm587_vm2, %v870_v25 }
 0x1ff   : > { %1436 = vmatpush3.bf16.msra.mxu0 %v761_v35 }
 0x200   : > { %1437 = vmatprep.subr.bf16.mxu0 %v759_v36 }
 0x201   : > { %v757_v37 = vpop.permute.xlu1 %756 }
 0x203   : > { %1438 = vmatpush3.bf16.msra.mxu0 %v759_v36 }
 0x204   : > { %1428 = vmatmul.mubr.msk.bf16.vlgmr.msra.gmra.mxu1 %vm587_vm2, %v568_v56  ;;  %1439 = vmatprep.subr.bf16.mxu0 %v757_v37 }
 0x205   : > { %1431 = vmatprep.mubr.msk.bf16.mxu1 %vm587_vm2, %v1841_v52  ;;  %1452 = vmatpush3.bf16.xpose.msra.mxu1 %v893_v38  ;;  %v755_v41 = vpop.permute.xlu1 %754 }
 0x206   : > { %1488 = vmatprep.subr.msk.bf16.mxu1 %vm587_vm2, %v868_v29 }
 0x207   : > { %1440 = vmatpush3.bf16.msra.mxu0 %v757_v37 }
 0x208   : > { %1441 = vmatprep.subr.bf16.mxu0 %v755_v41 }
 0x20b   : > { %1442 = vmatpush3.bf16.msra.mxu0 %v755_v41 }
 0x20c   : > { %1432 = vmatmul.mubr.msk.bf16.gmra.mxu1 %vm587_vm2, %v1839_v48 }
 0x20d   : > { %1454 = vmatpush3.bf16.xpose.msra.mxu1 %v890_v42  ;;  %1459 = vmatprep.mubr.msk.bf16.mxu1 %vm587_vm2, %v1853_v16 }
 0x20e   : > { %1489 = vmatprep.subr.msk.bf16.mxu1 %vm587_vm2, %v866_v30 }
 0x215   : > { %1456 = vmatpush3.bf16.xpose.msra.mxu1 %v887_v43 }
 0x216   : > { %1490 = vmatprep.subr.msk.bf16.mxu1 %vm587_vm2, %v864_v31 }
 0x21d   : > { %1458 = vmatpush3.bf16.xpose.msra.mxu1 %v884_v44 }
 0x224   : > { %1460 = vmatmul.mubr.msk.bf16.vlgmr.msra.gmra.mxu1 %vm587_vm2, %v1847_v13 }
 0x225   : > { %1463 = vmatprep.mubr.msk.bf16.mxu1 %vm587_vm2, %v1849_v15 }
 0x22c   : > { %1464 = vmatmul.mubr.msk.bf16.gmra.mxu1 %vm587_vm2, %v1845_v8 }
 0x2c4   : > { %v1429_v45 = vpop.f32.mrf.mxu1 }
 0x2c5   : > { %v684_v46 = vsel %vm677_vm3, %v1429_v45, -inf }
 0x2c6   : > { %685 = vmax.xlane.f32.xlu0 %v684_v46  ;;  %v646_v47 = vpop.f32.mrf.mxu1 }
 0x2c7   : > { %v678_v49 = vsel %vm677_vm3, %v646_v47, -inf }
 0x2c8   : > { %v1893_v48 = vpop.f32.mrf.mxu1 }
 0x2c9   : > { %v687_v55 = vsel %vm677_vm3, %v1893_v48, -inf }
 0x2ca   : > { %679 = vmax.xlane.f32.xlu0 %v678_v49  ;;  %v649_v50 = vpop.f32.mrf.mxu1 }
 0x2cb   : > { %v681_v51 = vsel %vm677_vm3, %v649_v50, -inf }
 0x2cc   : > { %682 = vmax.xlane.f32.xlu1 %v681_v51  ;;  %v1433_v52 = vpop.f32.mrf.mxu1 }
 0x2cd   : > { %v696_v57 = vsel %vm677_vm3, %v1433_v52, -inf }
 0x2ce   : > { %688 = vmax.xlane.f32.xlu0 %v687_v55  ;;  %v1899_v56 = vpop.f32.mrf.mxu1 }
 0x2cf   : > { %v690_v63 = vsel %vm677_vm3, %v1899_v56, -inf }
 0x2d0   : > { %697 = vmax.xlane.f32.xlu1 %v696_v57  ;;  %v1434_v60 = vpop.f32.mrf.mxu1 }
 0x2d1   : > { %v699_v61 = vsel %vm677_vm3, %v1434_v60, -inf }
 0x2d2   : > { %700 = vmax.xlane.f32.xlu0 %v699_v61  ;;  %v1903_v62 = vpop.f32.mrf.mxu1 }
 0x2d3   : > { %v693_v0 = vsel %vm677_vm3, %v1903_v62, -inf }
 0x2d4   : > { %691 = vmax.xlane.f32.xlu1 %v690_v63 }
 0x2d6   : > { %694 = vmax.xlane.f32.xlu0 %v693_v0 }
 0x2e4   : > { %v1909_v1 = vpop.f32.mrf.mxu1 }
 0x2e5   : > { %v966_v2 = vsel %vm677_vm3, %v1909_v1, -inf }
 0x2e6   : > { %v1913_v3 = vpop.f32.mrf.mxu1  ;;  %967 = vmax.xlane.f32.xlu0 %v966_v2 }
 0x2e7   : > { %v960_v4 = vsel %vm677_vm3, %v1913_v3, -inf }
 0x2e8   : > { %961 = vmax.xlane.f32.xlu1 %v960_v4  ;;  %v1917_v5 = vpop.f32.mrf.mxu1 }
 0x2e9   : > { %v969_v9 = vsel %vm677_vm3, %v1917_v5, -inf }
 0x2ea   : > { %v1921_v12 = vpop.f32.mrf.mxu1  ;;  %970 = vmax.xlane.f32.xlu0 %v969_v9 }
 0x2eb   : > { %v963_v17 = vsel %vm677_vm3, %v1921_v12, -inf }
 0x2ec   : > { %v1923_v14 = vpop.f32.mrf.mxu1 }
 0x2ed   : > { %v978_v20 = vsel %vm677_vm3, %v1923_v14, -inf }
 0x2ee   : > { %v1927_v18 = vpop.f32.mrf.mxu1  ;;  %964 = vmax.xlane.f32.xlu0 %v963_v17 }
 0x2ef   : > { %v972_v19 = vsel %vm677_vm3, %v1927_v18, -inf }
 0x2f0   : > { %973 = vmax.xlane.f32.xlu1 %v972_v19  ;;  %v1933_v23 = vpop.f32.mrf.mxu1 }
 0x2f1   : > { %v981_v24 = vsel %vm677_vm3, %v1933_v23, -inf }
 0x2f2   : > { %979 = vmax.xlane.f32.xlu0 %v978_v20  ;;  %v1937_v25 = vpop.f32.mrf.mxu1 }
 0x2f3   : > { %v975_v26 = vsel %vm677_vm3, %v1937_v25, -inf }
 0x2f6   : > { %982 = vmax.xlane.f32.xlu0 %v981_v24 }
 0x2fa   : > { %976 = vmax.xlane.f32.xlu0 %v975_v26 }
 0x301   : > { %1040 = vrot.lane.b32.xlu1 %v1849_v15, %s1649_s22 }
 0x305   : > { %1038 = vrot.lane.b32.xlu1 %v1847_v13, %s1649_s22 }
 0x309   : > { %1036 = vrot.lane.b32.xlu1 %v1853_v16, %s1649_s22 }
 0x310   : > { %1042 = vrot.lane.b32.xlu0 %v1845_v8, %s1649_s22 }
 0x34f   : > { %v686_v29 = vpop.xlane.xlu0 %685 }
 0x350   : > { %v704_v30 = vsub.f32 %v1429_v45, %v686_v29 }
 0x352   : > { %v714_v31 = vmul.f32 1.442695, %v704_v30 }
 0x353   : > { %v680_v34 = vpop.xlane.xlu0 %679 }
 0x354   : > { %1555 = vpow2.f32 %v714_v31  ;;  %v702_v35 = vsub.f32 %v646_v47, %v680_v34 }
 0x355   : > { %v683_v36 = vpop.xlane.xlu1 %682 }
 0x356   : > { %v710_v37 = vmul.f32 1.442695, %v702_v35  ;;  %v703_v38 = vsub.f32 %v649_v50, %v683_v36 }
 0x357   : > { %v689_v41 = vpop.xlane.xlu0 %688 }
 0x358   : > { %1557 = vpow2.f32 %v710_v37  ;;  %v712_v15 = vmul.f32 1.442695, %v703_v38  ;;  %v705_v13 = vsub.f32 %v1893_v48, %v689_v41 }
 0x359   : > { %v698_v42 = vpop.xlane.xlu1 %697 }
 0x35a   : > { %1559 = vpow2.f32 %v712_v15  ;;  %v716_v16 = vmul.f32 1.442695, %v705_v13  ;;  %v708_v43 = vsub.f32 %v1433_v52, %v698_v42 }
 0x35b   : > { %v701_v44 = vpop.xlane.xlu0 %700 }
 0x35c   : > { %1561 = vpow2.f32 %v716_v16  ;;  %v722_v8 = vmul.f32 1.442695, %v708_v43  ;;  %v709_v45 = vsub.f32 %v1434_v60, %v701_v44 }
 0x35d   : > { %v692_v46 = vpop.xlane.xlu1 %691 }
 0x35e   : > { %1563 = vpow2.f32 %v722_v8  ;;  %v706_v47 = vsub.f32 %v1899_v56, %v692_v46  ;;  %v724_v49 = vmul.f32 1.442695, %v709_v45 }
 0x35f   : > { %v695_v51 = vpop.xlane.xlu0 %694 }
 0x360   : > { %v718_v50 = vmul.f32 1.442695, %v706_v47  ;;  %v707_v55 = vsub.f32 %v1903_v62, %v695_v51 }
 0x361   : > { %v1556_v57 = vpop.eup %1555 }
 0x362   : > { %1565 = vpow2.f32 %v718_v50  ;;  %v720_v48 = vmul.f32 1.442695, %v707_v55  ;;  %v732_v61 = vsel %vm677_vm3, %v1556_v57, 0.0 }
 0x363   : > { %1567 = vpow2.f32 %v724_v49  ;;  %733 = vadd.xlane.f32.xlu1 %v732_v61 }
 0x364   : > { %1569 = vpow2.f32 %v720_v48 }
 0x365   : > { %v1558_v52 = vpop.eup %1557 }
 0x366   : > { %v726_v60 = vsel %vm677_vm3, %v1558_v52, 0.0 }
 0x367   : > { %v1560_v63 = vpop.eup %1559  ;;  %727 = vadd.xlane.f32.xlu1 %v726_v60 }
 0x368   : > { %v729_v56 = vsel %vm677_vm3, %v1560_v63, 0.0  ;;  %v750_v0 = vpack.c.bf16 %v1560_v63, %v1558_v52 }
 0x369   : > { %v1562_v2 = vpop.eup %1561  ;;  %730 = vadd.xlane.f32.xlu0 %v729_v56 }
 0x36a   : > { %v751_v4 = vpack.c.bf16 %v1562_v2, %v1556_v57  ;;  %1443 = vmatprep.mubr.msk.bf16.mxu0 %vm677_vm3, %v750_v0  ;;  %v735_v17 = vsel %vm677_vm3, %v1562_v2, 0.0 }
 0x36b   : > { %v1564_v62 = vpop.eup %1563 }
 0x36c   : > { %1444 = vmatmul.mubr.msk.bf16.vlgmr.msra.gmra.mxu0 %vm677_vm3, %v751_v4  ;;  %v744_v9 = vsel %vm677_vm3, %v1564_v62, 0.0 }
 0x36d   : > { %745 = vadd.xlane.f32.xlu1 %v744_v9  ;;  %736 = vadd.xlane.f32.xlu0 %v735_v17 }
 0x36f   : > { %v1566_v19 = vpop.eup %1565  ;;  %v968_v20 = vpop.xlane.xlu0 %967 }
 0x370   : > { %v1568_v24 = vpop.eup %1567  ;;  %v986_v26 = vsub.f32 %v1909_v1, %v968_v20  ;;  %v738_v29 = vsel %vm677_vm3, %v1566_v19, 0.0 }
 0x371   : > { %v1570_v30 = vpop.eup %1569  ;;  %v962_v31 = vpop.xlane.xlu1 %961  ;;  %739 = vadd.xlane.f32.xlu1 %v738_v29  ;;  %v753_v41 = vpack.c.bf16 %v1568_v24, %v1564_v62  ;;  %v747_v13 = vsel %vm677_vm3, %v1568_v24, 0.0 }
 0x372   : > { %v996_v34 = vmul.f32 1.442695, %v986_v26  ;;  %v984_v35 = vsub.f32 %v1913_v3, %v962_v31  ;;  %v741_v36 = vsel %vm677_vm3, %v1570_v30, 0.0  ;;  %v752_v37 = vpack.c.bf16 %v1570_v30, %v1566_v19 }
 0x373   : > { %742 = vadd.xlane.f32.xlu0 %v741_v36  ;;  %v971_v38 = vpop.xlane.xlu0 %970 }
 0x374   : > { %1571 = vpow2.f32 %v996_v34  ;;  %v992_v15 = vmul.f32 1.442695, %v984_v35  ;;  %1447 = vmatprep.mubr.msk.bf16.mxu0 %vm677_vm3, %v752_v37  ;;  %v987_v1 = vsub.f32 %v1917_v5, %v971_v38 }
 0x375   : > { %1448 = vmatmul.mubr.msk.bf16.gmra.mxu0 %vm677_vm3, %v753_v41 }
 0x376   : > { %1573 = vpow2.f32 %v992_v15  ;;  %v998_v43 = vmul.f32 1.442695, %v987_v1 }
 0x377   : > { %748 = vadd.xlane.f32.xlu0 %v747_v13  ;;  %v965_v42 = vpop.xlane.xlu0 %964 }
 0x378   : > { %v985_v3 = vsub.f32 %v1921_v12, %v965_v42 }
 0x379   : > { %v974_v16 = vpop.xlane.xlu1 %973 }
 0x37a   : > { %v994_v44 = vmul.f32 1.442695, %v985_v3  ;;  %v988_v8 = vsub.f32 %v1927_v18, %v974_v16 }
 0x37b   : > { %v980_v45 = vpop.xlane.xlu0 %979 }
 0x37c   : > { %1575 = vpow2.f32 %v994_v44  ;;  %v990_v46 = vsub.f32 %v1923_v14, %v980_v45  ;;  %v1000_v47 = vmul.f32 1.442695, %v988_v8 }
 0x37d   : > { %1577 = vpow2.f32 %v998_v43  ;;  %v1041_v48 = vpop.permute.xlu1 %1040  ;;  %v1985_v43 = vstv %s1141_s23 }
 0x37e   : > { %v1004_v49 = vmul.f32 1.442695, %v990_v46 }
 0x37f   : > { %v983_v51 = vpop.xlane.xlu0 %982 }
 0x380   : > { %1579 = vpow2.f32 %v1004_v49  ;;  %v991_v50 = vsub.f32 %v1933_v23, %v983_v51 }
 0x381   : > { %v1572_v5 = vpop.eup %1571  ;;  %1581 = vpow2.f32 %v1000_v47  ;;  %v1039_v2 = vpop.permute.xlu1 %1038 }
 0x382   : > { %v1014_v12 = vsel %vm677_vm3, %v1572_v5, 0.0  ;;  %v1006_v61 = vmul.f32 1.442695, %v991_v50 }
 0x383   : > { %v1574_v55 = vpop.eup %1573  ;;  %1015 = vadd.xlane.f32.xlu1 %v1014_v12  ;;  %v977_v57 = vpop.xlane.xlu0 %976 }
 0x384   : > { %v989_v18 = vsub.f32 %v1937_v25, %v977_v57  ;;  %v1008_v14 = vsel %vm677_vm3, %v1574_v55, 0.0 }
 0x385   : > { %v1037_v17 = vpop.permute.xlu1 %1036 }
 0x386   : > { %v1002_v52 = vmul.f32 1.442695, %v989_v18 }
 0x387   : > { %1009 = vadd.xlane.f32.xlu1 %v1008_v14  ;;  %v1043_v60 = vpop.permute.xlu0 %1042 }
 0x388   : > { %1583 = vpow2.f32 %v1002_v52  ;;  %1467 = vmatprep.subr.bf16.mxu0 %v1043_v60 }
 0x389   : > { %v1576_v63 = vpop.eup %1575  ;;  %1468 = vmatpush3.bf16.msra.mxu0 %v1043_v60  ;;  %1585 = vpow2.f32 %v1006_v61 }
 0x38a   : > { %1469 = vmatprep.subr.bf16.mxu0 %v1041_v48  ;;  %v1011_v23 = vsel %vm677_vm3, %v1576_v63, 0.0  ;;  %v1032_v56 = vpack.c.bf16 %v1576_v63, %v1574_v55  ;;  %v1578_v0 = vpop.eup %1577 }
 0x38b   : > { %1012 = vadd.xlane.f32.xlu0 %v1011_v23  ;;  %v1017_v4 = vsel %vm677_vm3, %v1578_v0, 0.0  ;;  %v1033_v24 = vpack.c.bf16 %v1578_v0, %v1572_v5 }
 0x38c   : > { %1475 = vmatprep.mubr.msk.bf16.mxu0 %vm677_vm3, %v1032_v56 }
 0x38d   : > { %v1580_v25 = vpop.eup %1579  ;;  %1470 = vmatpush3.bf16.msra.mxu0 %v1041_v48 }
 0x38e   : > { %1471 = vmatprep.subr.bf16.mxu0 %v1039_v2  ;;  %v1026_v62 = vsel %vm677_vm3, %v1580_v25, 0.0  ;;  %v1582_v9 = vpop.eup %1581 }
 0x38f   : > { %1018 = vadd.xlane.f32.xlu0 %v1017_v4  ;;  %1027 = vadd.xlane.f32.xlu1 %v1026_v62  ;;  %v1020_v19 = vsel %vm677_vm3, %v1582_v9, 0.0 }
 0x391   : > { %1472 = vmatpush3.bf16.msra.mxu0 %v1039_v2 }
 0x392   : > { %1473 = vmatprep.subr.bf16.mxu0 %v1037_v17 }
 0x393   : > { %1021 = vadd.xlane.f32.xlu1 %v1020_v19 }
 0x395   : > { %v1584_v20 = vpop.eup %1583  ;;  %1474 = vmatpush3.bf16.msra.mxu0 %v1037_v17 }
 0x396   : > { %v1023_v26 = vsel %vm677_vm3, %v1584_v20, 0.0  ;;  %v1034_v29 = vpack.c.bf16 %v1584_v20, %v1582_v9  ;;  %v1586_v30 = vpop.eup %1585 }
 0x397   : > { %1024 = vadd.xlane.f32.xlu0 %v1023_v26  ;;  %v1029_v31 = vsel %vm677_vm3, %v1586_v30, 0.0  ;;  %v1035_v34 = vpack.c.bf16 %v1586_v30, %v1580_v25 }
 0x398   : > { %1476 = vmatmul.mubr.msk.bf16.vlgmr.msra.gmra.mxu0 %vm677_vm3, %v1033_v24 }
 0x399   : > { %1479 = vmatprep.mubr.msk.bf16.mxu0 %vm677_vm3, %v1034_v29 }
 0x39b   : > { %1030 = vadd.xlane.f32.xlu0 %v1029_v31 }
 0x3a0   : > { %1480 = vmatmul.mubr.msk.bf16.gmra.mxu0 %vm677_vm3, %v1035_v34 }
 0x3ec   : > { %v734_v35 = vpop.xlane.xlu1 %733 }
 0x3f0   : > { %v728_v36 = vpop.xlane.xlu1 %727 }
 0x3f1   : > { %1587 = vrcp.f32 %v728_v36 }
 0x3f2   : > { %v731_v37 = vpop.xlane.xlu0 %730  ;;  %1589 = vrcp.f32 %v734_v35 }
 0x3f3   : > { %1591 = vrcp.f32 %v731_v37 }
 0x3f6   : > { %v746_v38 = vpop.xlane.xlu1 %745  ;;  %v737_v41 = vpop.xlane.xlu0 %736 }
 0x3f7   : > { %1593 = vrcp.f32 %v737_v41 }
 0x3fa   : > { %v740_v15 = vpop.xlane.xlu1 %739 }
 0x3fb   : > { %1595 = vrcp.f32 %v740_v15 }
 0x3fc   : > { %v743_v42 = vpop.xlane.xlu0 %742 }
 0x3fd   : > { %1597 = vrcp.f32 %v743_v42 }
 0x3fe   : > { %v1588_v13 = vpop.eup %1587  ;;  %1599 = vrcp.f32 %v746_v38 }
 0x3ff   : > { %v1590_v8 = vpop.eup %1589 }
 0x400   : > { %v1592_v46 = vpop.eup %1591  ;;  %v749_v57 = vpop.xlane.xlu0 %748 }
 0x401   : > { %1601 = vrcp.f32 %v749_v57 }
 0x404   : > { %v1594_v55 = vpop.eup %1593 }
 0x408   : > { %v1596_v60 = vpop.eup %1595 }
 0x40a   : > { %v1598_v0 = vpop.eup %1597 }
 0x40b   : > { %v1600_v62 = vpop.eup %1599 }
 0x40c   : > { %v1016_v19 = vpop.xlane.xlu1 %1015 }
 0x40e   : > { %v1602_v20 = vpop.eup %1601 }
 0x410   : > { %v1010_v29 = vpop.xlane.xlu1 %1009 }
 0x411   : > { %1603 = vrcp.f32 %v1010_v29 }
 0x412   : > { %1605 = vrcp.f32 %v1016_v19 }
 0x414   : > { %v1013_v31 = vpop.xlane.xlu0 %1012 }
 0x415   : > { %1607 = vrcp.f32 %v1013_v31 }
 0x418   : > { %v1019_v35 = vpop.xlane.xlu0 %1018 }
 0x419   : > { %1609 = vrcp.f32 %v1019_v35 }
 0x420   : > { %v1025_v38 = vpop.xlane.xlu0 %1024 }
 0x42c   : > { %v1445_v1 = vpop.f32.mrf.mxu0 }
 0x42d   : > { %v853_v49 = vmul.f32 %v1590_v8, %v1445_v1 }
 0x42e   : > { %v812_v3 = vpop.f32.mrf.mxu0 }
 0x42f   : > { %v851_v16 = vmul.f32 %v1588_v13, %v812_v3  ;;  %v1145_v18 = vmul.f32 %v1985_v43, %v853_v49 }
 0x430   : > { %v1446_v44 = vpop.f32.mrf.mxu0 }
 0x431   : > { %v1143_v45 = vmul.f32 %v1985_v43, %v851_v16  ;;  %v854_v48 = vmul.f32 %v1594_v55, %v1446_v44  ;;  %v1161_v23 = vadd.f32 %v1145_v18, %v1763_v39 }
 0x432   : > { %v815_v47 = vpop.f32.mrf.mxu0 }
 0x433   : > { %v852_v51 = vmul.f32 %v1592_v46, %v815_v47  ;;  %v1159_v5 = vadd.f32 %v1143_v45, %v1747_v27  ;;  %v1146_v63 = vmul.f32 %v1985_v43, %v854_v48  ;;  %v1031_v47 = vpop.xlane.xlu0 %1030 }
 0x435   : > { %v1144_v50 = vmul.f32 %v1985_v43, %v852_v51  ;;  %v1449_v12 = vpop.f32.mrf.mxu0  ;;  %1175 = vxpose.xlu1.b32.start [1/16] (narrow) %v1159_v5, 16  ;;  %v1162_v4 = vadd.f32 %v1146_v63, %v1766_v40 }
 0x437   : > { %v828_v61 = vpop.f32.mrf.mxu0  ;;  %v1160_v52 = vadd.f32 %v1144_v50, %v1750_v28  ;;  %v857_v28 = vmul.f32 %v1600_v62, %v1449_v12 }
 0x438   : > { %v855_v27 = vmul.f32 %v1596_v60, %v828_v61 }
 0x439   : > { %v1450_v14 = vpop.f32.mrf.mxu0  ;;  %1176 = vxpose.xlu1.b32.cont [2/16] (narrow) %v1160_v52, 16  ;;  %v1149_v39 = vmul.f32 %v1985_v43, %v857_v28 }
 0x43a   : > { %v1147_v2 = vmul.f32 %v1985_v43, %v855_v27  ;;  %v858_v24 = vmul.f32 %v1602_v20, %v1450_v14 }
 0x43b   : > { %v831_v56 = vpop.f32.mrf.mxu0  ;;  %v1165_v40 = vadd.f32 %v1149_v39, %v1778_v53 }
 0x43c   : > { %v856_v25 = vmul.f32 %v1598_v0, %v831_v56  ;;  %v1163_v17 = vadd.f32 %v1147_v2, %v1753_v32  ;;  %v1150_v30 = vmul.f32 %v1985_v43, %v858_v24  ;;  %v1028_v32 = vpop.xlane.xlu1 %1027 }
 0x43d   : > { %1177 = vxpose.xlu1.b32.cont [3/16] (narrow) %v1161_v23, 16 }
 0x43e   : > { %v1148_v9 = vmul.f32 %v1985_v43, %v856_v25  ;;  %v1166_v34 = vadd.f32 %v1150_v30, %v1781_v54 }
 0x440   : > { %v1164_v26 = vadd.f32 %v1148_v9, %v1756_v33  ;;  %v1022_v36 = vpop.xlane.xlu1 %1021  ;;  %v1604_v33 = vpop.eup %1603 }
 0x441   : > { %1178 = vxpose.xlu1.b32.cont [4/16] (narrow) %v1162_v4, 16  ;;  %1611 = vrcp.f32 %v1022_v36  ;;  %v1606_v53 = vpop.eup %1605 }
 0x442   : > { %1613 = vrcp.f32 %v1025_v38  ;;  %v1608_v42 = vpop.eup %1607 }
 0x443   : > { %1615 = vrcp.f32 %v1028_v32  ;;  %v1610_v46 = vpop.eup %1609 }
 0x444   : > { %1617 = vrcp.f32 %v1031_v47 }
 0x445   : > { %1179 = vxpose.xlu1.b32.cont [5/16] (narrow) %v1163_v17, 16 }
 0x449   : > { %1180 = vxpose.xlu1.b32.cont [6/16] (narrow) %v1164_v26, 16 }
 0x44d   : > { %1181 = vxpose.xlu1.b32.cont [7/16] (narrow) %v1165_v40, 16 }
 0x44e   : > { %v1612_v55 = vpop.eup %1611 }
 0x44f   : > { %v1614_v61 = vpop.eup %1613 }
 0x451   : > { %1182 = vxpose.xlu1.b32.cont [8/16] (narrow) %v1166_v34, 16 }
 0x458   : > { %v1477_v37 = vpop.f32.mrf.mxu0 }
 0x459   : > { %v1135_v3 = vmul.f32 %v1606_v53, %v1477_v37 }
 0x45a   : > { %v1094_v41 = vpop.f32.mrf.mxu0 }
 0x45b   : > { %v1133_v15 = vmul.f32 %v1604_v33, %v1094_v41  ;;  %v1153_v51 = vmul.f32 %v1985_v43, %v1135_v3 }
 0x45c   : > { %v1478_v1 = vpop.f32.mrf.mxu0 }
 0x45d   : > { %v1151_v13 = vmul.f32 %v1985_v43, %v1133_v15  ;;  %v1136_v5 = vmul.f32 %v1610_v46, %v1478_v1  ;;  %v1169_v18 = vadd.f32 %v1153_v51, %v1800_v6 }
 0x45e   : > { %v1097_v54 = vpop.f32.mrf.mxu0 }
 0x45f   : > { %v1134_v16 = vmul.f32 %v1608_v42, %v1097_v54  ;;  %v1167_v44 = vadd.f32 %v1151_v13, %v1784_v58  ;;  %v1154_v57 = vmul.f32 %v1985_v43, %v1136_v5 }
 0x460   : > { %v1481_v8 = vpop.f32.mrf.mxu0 }
 0x461   : > { %v1152_v45 = vmul.f32 %v1985_v43, %v1134_v16  ;;  %1183 = vxpose.xlu1.b32.cont [9/16] (narrow) %v1167_v44, 16  ;;  %v1170_v60 = vadd.f32 %v1154_v57, %v1803_v7 }
 0x462   : > { %v1110_v49 = vpop.f32.mrf.mxu0 }
 0x463   : > { %v1168_v50 = vadd.f32 %v1152_v45, %v1787_v59  ;;  %v1137_v58 = vmul.f32 %v1612_v55, %v1110_v49  ;;  %v1616_v59 = vpop.eup %1615 }
 0x464   : > { %v1482_v12 = vpop.f32.mrf.mxu0  ;;  %v1139_v63 = vmul.f32 %v1616_v59, %v1481_v8  ;;  %v1618_v56 = vpop.eup %1617 }
 0x465   : > { %1184 = vxpose.xlu1.b32.cont [10/16] (narrow) %v1168_v50, 16  ;;  %v1155_v52 = vmul.f32 %v1985_v43, %v1137_v58  ;;  %v1140_v0 = vmul.f32 %v1618_v56, %v1482_v12 }
 0x466   : > { %v1113_v48 = vpop.f32.mrf.mxu0  ;;  %v1157_v6 = vmul.f32 %v1985_v43, %v1139_v63 }
 0x467   : > { %v1138_v14 = vmul.f32 %v1614_v61, %v1113_v48  ;;  %v1171_v23 = vadd.f32 %v1155_v52, %v1806_v10  ;;  %v1158_v25 = vmul.f32 %v1985_v43, %v1140_v0 }
 0x468   : > { %v1173_v7 = vadd.f32 %v1157_v6, %v1822_v21 }
 0x469   : > { %1185 = vxpose.xlu1.b32.cont [11/16] (narrow) %v1169_v18, 16  ;;  %v1156_v27 = vmul.f32 %v1985_v43, %v1138_v14  ;;  %v1174_v4 = vadd.f32 %v1158_v25, %v1825_v22 }
 0x46b   : > { %v1172_v2 = vadd.f32 %v1156_v27, %v1809_v11 }
 0x46d   : > { %1186 = vxpose.xlu1.b32.cont [12/16] (narrow) %v1170_v60, 16 }
 0x471   : > { %1187 = vxpose.xlu1.b32.cont [13/16] (narrow) %v1171_v23, 16 }
 0x475   : > { %1188 = vxpose.xlu1.b32.cont [14/16] (narrow) %v1172_v2, 16 }
 0x479   : > { %1189 = vxpose.xlu1.b32.cont [15/16] (narrow) %v1173_v7, 16 }
 0x47d   : > { %1190 = vxpose.xlu1.b32.end [16/16] (narrow) %v1174_v4, 16 }
 0x4bd   : > { %v1191_v10 = vpop.trf.xlu1 }
 0x4be   : > { %1207 = vst [vmem:[%s299_s25] sm:$0xff] %v1191_v10 }
 0x4c1   : > { %v1192_v62 = vpop.trf.xlu1 }
 0x4c2   : > { %1208 = vst [vmem:[%s299_s25 + $0x8] sm:$0xff] %v1192_v62 }
 0x4c3 PF: > { %s16_s18 = sadd.s32 1, %s1644_s18  }
 0x4c4   : > { %p13_p2 = scmp.ge.s32.totalorder %s16_s18, 4  }
 0x4c6   :  { %15 = sbr.rel (!%p13_p2) target bundleno = 1 (0x1), region = 84 }
 0x4cb   :  { %1230 = vsyncpa [#allocation3], 1 }
 0x4cc   :  { %1232 = vsyncpa [#allocation3 + $0x1], 1 }

</bundles_post_ra>
